<compile_context>
chip_gen: v5e
topology: v5e:2x2
jax: 0.10.0
libtpu: 0.0.40
codegen_flags: <defaults>
</compile_context>

<pallas_src>
import functools

import jax
import jax.numpy as jnp
from jax.experimental import pallas as pl
from jax.experimental.pallas import tpu as pltpu


def actor_kernel(x_ref, w1_ref, b1_ref, w2_ref, b2_ref, w3_ref, b3_ref, o_ref,
                 *, bf16_epilogue):
    # Cast obs to bf16 in-kernel (VPU cast hides under the MXU); f32 accumulate.
    x = x_ref[...].astype(jnp.bfloat16)

    # FC1
    h1 = jnp.dot(x, w1_ref[...], preferred_element_type=jnp.float32)
    if bf16_epilogue:
        h1 = jnp.maximum(h1.astype(jnp.bfloat16) + b1_ref[...], 0)
    else:
        h1 = jnp.maximum(h1 + b1_ref[...], 0.0).astype(jnp.bfloat16)

    # FC2
    h2 = jnp.dot(h1, w2_ref[...], preferred_element_type=jnp.float32)
    if bf16_epilogue:
        h2 = jnp.maximum(h2.astype(jnp.bfloat16) + b2_ref[...], 0)
    else:
        h2 = jnp.maximum(h2 + b2_ref[...], 0.0).astype(jnp.bfloat16)

    # FC3 (no activation). Output block is lane-dense (padded to 128 cols).
    out = jnp.dot(h2, w3_ref[...], preferred_element_type=jnp.float32)
    o_ref[...] = (out + b3_ref[...]).astype(o_ref.dtype)


def _round_up(x, m):
    return ((x + m - 1) // m) * m


def actor_forward(obs, params, *, tile_m=1024):
    """obs: (B, dim_obs) float32. params: dict of W1,b1,W2,b2,W3,b3 (f32, (in,out))."""
    B, dim_obs = obs.shape
    h1_dim = params["W1"].shape[1]
    h2_dim = params["W2"].shape[1]
    dim_act = params["W3"].shape[1]

    # bf16 VALU epilogue on v6e/v7x; keep f32 epilogue on v5e and older (no bf16 VALU).
    try:
        kind = jax.devices()[0].device_kind.lower()
        bf16_epilogue = ("v6" in kind) or ("v7" in kind)
    except Exception:
        bf16_epilogue = False

    # --- Batch tile selection -------------------------------------------------
    # Multiple of 16 (bf16 sublane tile), clamped to the batch; keep >=2 grid
    # steps when the batch is large enough so v7x can shard across both TCs.
    tm = min(tile_m, _round_up(B, 16))
    tm = max(16, (tm // 16) * 16)
    if pl.cdiv(B, tm) == 1 and B >= 32:
        tm = max(16, _round_up(pl.cdiv(B, 2), 16))
    if tm > B:
        tm = B  # tiny batch: full-extent block (always layout-legal)
    grid = (pl.cdiv(B, tm),)  # ragged last tile handled by Pallas block masking

    # --- Lane-dense output: pad W3/b3 columns to a multiple of 128 -------------
    out_cols = max(128, _round_up(dim_act, 128))
    pad_cols = out_cols - dim_act

    ep_dt = jnp.bfloat16 if bf16_epilogue else jnp.float32
    w1 = params["W1"].astype(jnp.bfloat16)
    w2 = params["W2"].astype(jnp.bfloat16)
    w3 = params["W3"].astype(jnp.bfloat16)
    b1 = params["b1"].astype(ep_dt)
    b2 = params["b2"].astype(ep_dt)
    b3 = params["b3"].astype(jnp.float32)
    if pad_cols:
        w3 = jnp.pad(w3, ((0, 0), (0, pad_cols)))  # zero cols -> sliced output exact
        b3 = jnp.pad(b3, ((0, 0), (0, pad_cols)))

    const = lambda i: (0, 0)  # weights/biases: same block every step -> stay resident

    # --- Cost estimate from actual shapes --------------------------------------
    bias_bytes = 2 if bf16_epilogue else 4
    cost = pl.CostEstimate(
        flops=2 * B * (dim_obs * h1_dim + h1_dim * h2_dim + h2_dim * out_cols),
        bytes_accessed=(obs.size * 4
                        + (w1.size + w2.size + w3.size) * 2
                        + (b1.size + b2.size) * bias_bytes + b3.size * 4
                        + B * out_cols * 4),
        transcendentals=0,
    )

    # --- VMEM budget (only matters if tiles are pushed very large on v5e) -----
    vmem_est = (2 * tm * dim_obs * 4              # obs tiles, double-buffered, f32
                + 2 * tm * out_cols * 4           # out tiles, double-buffered, f32
                + 2 * (w1.size + w2.size + w3.size) * 2
                + 2 * (b1.size + b2.size) * bias_bytes + 2 * b3.size * 4)
    compiler_kwargs = dict(dimension_semantics=("parallel",))
    if vmem_est > 12 * 1024 * 1024:
        compiler_kwargs["vmem_limit_bytes"] = int(vmem_est * 1.5)

    out = pl.pallas_call(
        functools.partial(actor_kernel, bf16_epilogue=bf16_epilogue),
        out_shape=jax.ShapeDtypeStruct((B, out_cols), jnp.float32),
        grid=grid,
        in_specs=[
            pl.BlockSpec((tm, dim_obs), lambda i: (i, 0)),     # obs tile, pipelined
            pl.BlockSpec((dim_obs, h1_dim), const),            # W1 resident
            pl.BlockSpec((1, h1_dim), const),                  # b1
            pl.BlockSpec((h1_dim, h2_dim), const),             # W2
            pl.BlockSpec((1, h2_dim), const),                  # b2
            pl.BlockSpec((h2_dim, out_cols), const),           # W3 (zero-padded cols)
            pl.BlockSpec((1, out_cols), const),                # b3 (zero-padded cols)
        ],
        out_specs=pl.BlockSpec((tm, out_cols), lambda i: (i, 0)),  # lane-dense stores
        compiler_params=pltpu.CompilerParams(**compiler_kwargs),
        cost_estimate=cost,
    )(obs, w1, b1, w2, b2, w3, b3)

    return out[:, :dim_act] if pad_cols else out


def init_actor_params(key, dim_obs, dim_act):
    """Deterministic init. Weights stored as (in, out); biases as (1, out)."""
    k1, k2, k3, k4, k5, k6 = jax.random.split(key, 6)

    def uniform_linear(kw, kb, fan_in, fan_out):
        # mimic PyTorch default Linear init: U(-1/sqrt(fan_in), 1/sqrt(fan_in))
        bound = 1.0 / jnp.sqrt(jnp.float32(fan_in))
        W = jax.random.uniform(kw, (fan_in, fan_out), jnp.float32, -bound, bound)
        b = jax.random.uniform(kb, (1, fan_out), jnp.float32, -bound, bound)
        return W, b

    W1, b1 = uniform_linear(k1, k2, dim_obs, 256)
    W2, b2 = uniform_linear(k3, k4, 256, 128)
    W3, b3 = uniform_linear(k5, k6, 128, dim_act)
    return {"W1": W1, "b1": b1, "W2": W2, "b2": b2, "W3": W3, "b3": b3}


def actor_ref(obs, p):
    h1 = jax.nn.relu(obs @ p["W1"] + p["b1"])
    h2 = jax.nn.relu(h1 @ p["W2"] + p["b2"])
    return h2 @ p["W3"] + p["b3"]


if __name__ == "__main__":
    key = jax.random.PRNGKey(0)
    k_obs, k_params = jax.random.split(key)

    batch = 8
    dim_obs = (32,)   # dim_obs[0] == 32
    dim_act = 8

    obs = jax.random.normal(k_obs, (batch, dim_obs[0]), jnp.float32)
    params = init_actor_params(k_params, dim_obs[0], dim_act)

    out = actor_forward(obs, params)
    out = jax.block_until_ready(out)

    # sanity checks
    ref_f32 = actor_ref(obs, params)                      # pure-f32 reference
    p_bf16 = {k: (v.astype(jnp.bfloat16).astype(jnp.float32) if k.startswith("W") else v)
              for k, v in params.items()}
    ref_bf16 = actor_ref(obs.astype(jnp.bfloat16).astype(jnp.float32), p_bf16)

    assert out.shape == (batch, dim_act)
    # moderately tight vs bf16-weight-matched reference, loose vs full-f32 reference
    assert jnp.allclose(out, ref_bf16, atol=2e-2, rtol=2e-2)
    assert jnp.allclose(out, ref_f32, atol=5e-2, rtol=5e-2)

    print("KERNEL_OK")
</pallas_src>

<mosaic_0001>
module attributes {stable_mosaic.version = 11 : i64} {
  func.func @actor_kernel(%arg0: i32, %arg1: memref<8x32xf32, #tpu.memory_space<vmem>>, %arg2: memref<32x256xbf16, #tpu.memory_space<vmem>>, %arg3: memref<1x256xf32, #tpu.memory_space<vmem>>, %arg4: memref<256x128xbf16, #tpu.memory_space<vmem>>, %arg5: memref<1x128xf32, #tpu.memory_space<vmem>>, %arg6: memref<128x128xbf16, #tpu.memory_space<vmem>>, %arg7: memref<1x128xf32, #tpu.memory_space<vmem>>, %arg8: memref<8x128xf32, #tpu.memory_space<vmem>>) attributes {dimension_semantics = [#tpu.dimension_semantics<parallel>], iteration_bounds = array<i64: 1>, scalar_prefetch = 0 : i64, scratch_operands = 0 : i64, tpu.core_type = #tpu.core_type<tc>, window_params = [{transform_indices = @transform_0, window_bounds = array<i64: 8, 32>}, {pipeline_mode = #tpu.pipeline_mode<synchronous>, transform_indices = @transform_1, window_bounds = array<i64: 32, 256>}, {pipeline_mode = #tpu.pipeline_mode<synchronous>, transform_indices = @transform_2, window_bounds = array<i64: 1, 256>}, {pipeline_mode = #tpu.pipeline_mode<synchronous>, transform_indices = @transform_3, window_bounds = array<i64: 256, 128>}, {pipeline_mode = #tpu.pipeline_mode<synchronous>, transform_indices = @transform_4, window_bounds = array<i64: 1, 128>}, {pipeline_mode = #tpu.pipeline_mode<synchronous>, transform_indices = @transform_5, window_bounds = array<i64: 128, 128>}, {pipeline_mode = #tpu.pipeline_mode<synchronous>, transform_indices = @transform_6, window_bounds = array<i64: 1, 128>}, {transform_indices = @transform_7, window_bounds = array<i64: 8, 128>}]} {
    %c0 = arith.constant 0 : index
    %c0_0 = arith.constant 0 : index
    %0 = vector.load %arg1[%c0, %c0_0] : memref<8x32xf32, #tpu.memory_space<vmem>>, vector<8x32xf32>
    %1 = arith.truncf %0 : vector<8x32xf32> to vector<8x32xbf16>
    %c0_1 = arith.constant 0 : index
    %c0_2 = arith.constant 0 : index
    %2 = vector.load %arg2[%c0_1, %c0_2] : memref<32x256xbf16, #tpu.memory_space<vmem>>, vector<32x256xbf16>
    %cst = arith.constant dense<0.000000e+00> : vector<8x256xf32>
    %3 = tpu.matmul %1, %2, %cst {dimension_numbers = #tpu.dot_dimension_numbers<[1], [0], [0], [1], [0, 0, 1, 1], [], []>} : vector<8x32xbf16>, vector<32x256xbf16>, vector<8x256xf32> -> vector<8x256xf32>
    %c0_3 = arith.constant 0 : index
    %c0_4 = arith.constant 0 : index
    %4 = vector.load %arg3[%c0_3, %c0_4] : memref<1x256xf32, #tpu.memory_space<vmem>>, vector<1x256xf32>
    %5 = vector.broadcast %4 : vector<1x256xf32> to vector<8x256xf32>
    %6 = arith.addf %3, %5 : vector<8x256xf32>
    %cst_5 = arith.constant 0.000000e+00 : f32
    %7 = vector.broadcast %cst_5 : f32 to vector<8x256xf32>
    %8 = arith.maximumf %6, %7 : vector<8x256xf32>
    %9 = arith.truncf %8 : vector<8x256xf32> to vector<8x256xbf16>
    %c0_6 = arith.constant 0 : index
    %c0_7 = arith.constant 0 : index
    %10 = vector.load %arg4[%c0_6, %c0_7] : memref<256x128xbf16, #tpu.memory_space<vmem>>, vector<256x128xbf16>
    %cst_8 = arith.constant dense<0.000000e+00> : vector<8x128xf32>
    %11 = tpu.matmul %9, %10, %cst_8 {dimension_numbers = #tpu.dot_dimension_numbers<[1], [0], [0], [1], [0, 0, 1, 1], [], []>} : vector<8x256xbf16>, vector<256x128xbf16>, vector<8x128xf32> -> vector<8x128xf32>
    %c0_9 = arith.constant 0 : index
    %c0_10 = arith.constant 0 : index
    %12 = vector.load %arg5[%c0_9, %c0_10] : memref<1x128xf32, #tpu.memory_space<vmem>>, vector<1x128xf32>
    %13 = vector.broadcast %12 : vector<1x128xf32> to vector<8x128xf32>
    %14 = arith.addf %11, %13 : vector<8x128xf32>
    %cst_11 = arith.constant 0.000000e+00 : f32
    %15 = vector.broadcast %cst_11 : f32 to vector<8x128xf32>
    %16 = arith.maximumf %14, %15 : vector<8x128xf32>
    %17 = arith.truncf %16 : vector<8x128xf32> to vector<8x128xbf16>
    %c0_12 = arith.constant 0 : index
    %c0_13 = arith.constant 0 : index
    %18 = vector.load %arg6[%c0_12, %c0_13] : memref<128x128xbf16, #tpu.memory_space<vmem>>, vector<128x128xbf16>
    %cst_14 = arith.constant dense<0.000000e+00> : vector<8x128xf32>
    %19 = tpu.matmul %17, %18, %cst_14 {dimension_numbers = #tpu.dot_dimension_numbers<[1], [0], [0], [1], [0, 0, 1, 1], [], []>} : vector<8x128xbf16>, vector<128x128xbf16>, vector<8x128xf32> -> vector<8x128xf32>
    %c0_15 = arith.constant 0 : index
    %c0_16 = arith.constant 0 : index
    %20 = vector.load %arg7[%c0_15, %c0_16] : memref<1x128xf32, #tpu.memory_space<vmem>>, vector<1x128xf32>
    %21 = vector.broadcast %20 : vector<1x128xf32> to vector<8x128xf32>
    %22 = arith.addf %19, %21 : vector<8x128xf32>
    %c0_17 = arith.constant 0 : index
    %c0_18 = arith.constant 0 : index
    %23 = vector.load %arg8[%c0_17, %c0_18] : memref<8x128xf32, #tpu.memory_space<vmem>>, vector<8x128xf32>
    tpu.vector_store %arg8[%c0_17, %c0_18], %22 {strides = array<i32>} : memref<8x128xf32, #tpu.memory_space<vmem>>, vector<8x128xf32>,
    return
  }
  func.func @transform_0(%arg0: i32) -> (i32, i32) {
    %c0_i32 = arith.constant 0 : i32
    %c0_i32_0 = arith.constant 0 : i32
    return %arg0, %c0_i32 : i32, i32
  }
  func.func @transform_1(%arg0: i32) -> (i32, i32) {
    %c0_i32 = arith.constant 0 : i32
    %c0_i32_0 = arith.constant 0 : i32
    %c0_i32_1 = arith.constant 0 : i32
    return %c0_i32, %c0_i32_0 : i32, i32
  }
  func.func @transform_2(%arg0: i32) -> (i32, i32) {
    %c0_i32 = arith.constant 0 : i32
    %c0_i32_0 = arith.constant 0 : i32
    %c0_i32_1 = arith.constant 0 : i32
    return %c0_i32, %c0_i32_0 : i32, i32
  }
  func.func @transform_3(%arg0: i32) -> (i32, i32) {
    %c0_i32 = arith.constant 0 : i32
    %c0_i32_0 = arith.constant 0 : i32
    %c0_i32_1 = arith.constant 0 : i32
    return %c0_i32, %c0_i32_0 : i32, i32
  }
  func.func @transform_4(%arg0: i32) -> (i32, i32) {
    %c0_i32 = arith.constant 0 : i32
    %c0_i32_0 = arith.constant 0 : i32
    %c0_i32_1 = arith.constant 0 : i32
    return %c0_i32, %c0_i32_0 : i32, i32
  }
  func.func @transform_5(%arg0: i32) -> (i32, i32) {
    %c0_i32 = arith.constant 0 : i32
    %c0_i32_0 = arith.constant 0 : i32
    %c0_i32_1 = arith.constant 0 : i32
    return %c0_i32, %c0_i32_0 : i32, i32
  }
  func.func @transform_6(%arg0: i32) -> (i32, i32) {
    %c0_i32 = arith.constant 0 : i32
    %c0_i32_0 = arith.constant 0 : i32
    %c0_i32_1 = arith.constant 0 : i32
    return %c0_i32, %c0_i32_0 : i32, i32
  }
  func.func @transform_7(%arg0: i32) -> (i32, i32) {
    %c0_i32 = arith.constant 0 : i32
    %c0_i32_0 = arith.constant 0 : i32
    return %arg0, %c0_i32 : i32, i32
  }
}

</mosaic_0001>

<bundles_post_ra>
// kernel: tpu_custom_call.1
= control target key start
LH: loop header
LB: loop body
LE: loop exit
PB: predicated region body
PF: predicated region fallthrough
CT: control target
= control target key end

     0   :  { %12 = vsyncpa [#allocation3], 0  ;;  %s809_s0 = inlined_call_operand.hbm [shape: f32[8,32], index: 0, kind: input, shape index: {}]   ;;  %s810_s1 = inlined_call_operand.hbm [shape: bf16[32,256], index: 1, kind: input, shape index: {}]   ;;  %s811_s2 = inlined_call_operand.hbm [shape: f32[1,256], index: 2, kind: input, shape index: {}]   ;;  %s812_s3 = inlined_call_operand.hbm [shape: bf16[256,128], index: 3, kind: input, shape index: {}]   ;;  %s813_s4 = inlined_call_operand.vmem [shape: f32[1,128], index: 4, kind: input, shape index: {}]   ;;  %s814_s5 = inlined_call_operand.hbm [shape: bf16[128,128], index: 5, kind: input, shape index: {}]   ;;  %s815_s6 = inlined_call_operand.vmem [shape: f32[1,128], index: 6, kind: input, shape index: {}]   ;;  %s816_s7 = inlined_call_operand.hbm [shape: f32[8,128], index: 7, kind: output, shape index: {}]  }
   0x1   :  { %13 = vsyncpa [#allocation6], 0 }
   0x2   :  { %14 = vsyncpa [#allocation9], 0  ;;  %s31_s26 = sshll.u32 %s810_s1, 4  ;;  %s32_s26 = int_to_ptr.hbm [resolvable:$true] %s31_s26 }
   0x3   :  { %15 = vsyncpa [#allocation4], 0  ;;  %s735_s27 = smov [#allocation5]   ;;  %s55_s8 = sshll.u32 %s812_s3, 4  ;;  %s56_s8 = int_to_ptr.hbm [resolvable:$true] %s55_s8 }
   0x4   :  { %s33_s28 = sshll.u32 %s735_s27, 4  ;;  %s736_s9 = smov 128   ;;  %s34_s28 = int_to_ptr.vmem [resolvable:$true] %s33_s28 }
   0x5   :  { %s737_s10 = smov 8   ;;  %s738_s11 = smov [#allocation8]  }
   0x6   :  { %39 = dma.hbm_to_vmem [thread:$0]  %s32_s26, 512, %s34_s28, [#allocation6], %s736_s9, %s736_s9, %s737_s10  }
   0x7   :  { %s57_s12 = sshll.u32 %s738_s11, 4  ;;  %s739_s13 = smov 64   ;;  %s58_s12 = int_to_ptr.vmem [resolvable:$true] %s57_s12 }
   0x8   :  { %s740_s14 = smov 4   ;;  %s21_s16 = sshll.u32 %s809_s0, 4  ;;  %s22_s16 = int_to_ptr.hbm [resolvable:$true] %s21_s16 }
   0x9   :  { %63 = dma.hbm_to_vmem [thread:$0]  %s56_s8, 2048, %s58_s12, [#allocation9], %s739_s13, %s739_s13, %s740_s14  }
   0xa   :  { %s741_s17 = smov [#allocation2]   ;;  %s45_s20 = sshll.u32 %s811_s2, 4  ;;  %s46_s20 = int_to_ptr.hbm [resolvable:$true] %s45_s20 }
   0xb   :  { %s23_s18 = sshll.u32 %s741_s17, 4  ;;  %s742_s21 = smov [#allocation7]   ;;  %s24_s18 = int_to_ptr.vmem [resolvable:$true] %s23_s18 }
   0xc   :  { %26 = dma.hbm_to_vmem [thread:$0]  %s22_s16, 128, %s24_s18, [#allocation3]  }
   0xd   :  { %s47_s22 = sshll.u32 %s742_s21, 4  ;;  %s70_s25 = sshll.u32 %s814_s5, 4  ;;  %s48_s22 = int_to_ptr.vmem [resolvable:$true] %s47_s22  ;;  %s71_s25 = int_to_ptr.hbm [resolvable:$true] %s70_s25 }
   0xe   :  { %50 = dma.hbm_to_vmem [thread:$0]  %s46_s20, 32, %s48_s22, [#allocation6]  }
   0xf   :  { %s743_s0 = smov [#allocation10]  }
  0x10   :  { %s72_s26 = sshll.u32 %s743_s0, 4  ;;  %s73_s26 = int_to_ptr.vmem [resolvable:$true] %s72_s26 }
  0x11   :  { %78 = dma.hbm_to_vmem [thread:$0]  %s71_s25, 1024, %s73_s26, [#allocation9], %s739_s13, %s739_s13, %s740_s14  }
  0x12   :  { %727 = dma.done.wait [#allocation3], 128  }
  0x13   :  { %728 = vsyncadd [#allocation3], 4294967168 }
  0x14   :  { %729 = dma.done.wait [#allocation6], 544  }
  0x15   :  { %730 = vsyncadd [#allocation6], 4294966752 }
  0x16   :  { %731 = dma.done.wait [#allocation9], 3072  }
  0x17   :  { %732 = vsyncadd [#allocation9], 4294964224  ;;  %v439_v0 = vld [vmem:[#allocation5 + $0x10] sm:$0xf]  ;;  %v546_v1 = vld [vmem:[#allocation5 + $0x14] sm:$0xf0] }
  0x18   :  { %v431_v2 = vld [vmem:[#allocation5] sm:$0xf]  ;;  %v440_v3 = vor.u32 %v546_v1, %v439_v0  ;;  %v544_v4 = vld [vmem:[#allocation5 + $0x4] sm:$0xf0]  ;;  %v545_v5 = vld [vmem:[#allocation5 + $0x14] sm:$0xf] }
  0x19   :  { %v441_v6 = vld [vmem:[#allocation5 + $0x18] sm:$0xf0]  ;;  %v432_v7 = vor.u32 %v544_v4, %v431_v2  ;;  %v543_v12 = vld [vmem:[#allocation5 + $0x4] sm:$0xf]  ;;  %v433_v13 = vld [vmem:[#allocation5 + $0x8] sm:$0xf0] }
  0x1a   :  { %144 = vmatpush.bf16.msra.mxu1 %v440_v3  ;;  %v102_v8 = vld [vmem:[#allocation2] sm:$0xff]  ;;  %v444_v10 = vor.u32 %v545_v5, %v441_v6  ;;  %vm134_vm0 = vcmask 261120   ;;  %v436_v17 = vor.u32 %v543_v12, %v433_v13  ;;  %v552_v18 = vld [vmem:[#allocation8 + $0x28] sm:$0xff]  ;;  %v551_v19 = vld [vmem:[#allocation8 + $0x20] sm:$0xff]  ;;  %s744_s29 = smov [#allocation11]   ;;  %s417_s10 = sshll.u32 %s816_s7, 4  ;;  %s418_s10 = int_to_ptr.hbm [resolvable:$true] %s417_s10 }
  0x1b   :  { %v554_v9 = vld [vmem:[#allocation8 + $0x38] sm:$0xff]  ;;  %v553_v14 = vld [vmem:[#allocation8 + $0x30] sm:$0xff]  ;;  %v103_v15 = vpack.c.bf16 %v102_v8, %v102_v8  ;;  %v548_v22 = vld [vmem:[#allocation8 + $0x8] sm:$0xff]  ;;  %s415_s30 = sshll.u32 %s744_s29, 4  ;;  %s416_s30 = int_to_ptr.vmem [resolvable:$true] %s415_s30 }
  0x1c   :  { %v562_v11 = vld [vmem:[#allocation8 + $0x78] sm:$0xff]  ;;  %300 = vmatpush.bf16.msra.mxu2 %v554_v9  ;;  %v561_v16 = vld [vmem:[#allocation8 + $0x70] sm:$0xff]  ;;  %v560_v23 = vld [vmem:[#allocation8 + $0x68] sm:$0xff] }
  0x1d   :  { %313 = vmatpush.bf16.msra.mxu3 %v562_v11  ;;  %v550_v20 = vld [vmem:[#allocation8 + $0x18] sm:$0xff]  ;;  %v549_v21 = vld [vmem:[#allocation8 + $0x10] sm:$0xff]  ;;  %v547_v24 = vld [vmem:[#allocation8] sm:$0xff] }
  0x1e   :  { %145 = vmatpush.bf16.msra.mxu1 %v432_v7  ;;  %v559_v25 = vld [vmem:[#allocation8 + $0x60] sm:$0xff]  ;;  %v558_v26 = vld [vmem:[#allocation8 + $0x58] sm:$0xff]  ;;  %v557_v27 = vld [vmem:[#allocation8 + $0x50] sm:$0xff] }
  0x1f   :  { %v556_v28 = vld [vmem:[#allocation8 + $0x48] sm:$0xff]  ;;  %v555_v29 = vld [vmem:[#allocation8 + $0x40] sm:$0xff]  ;;  %v570_v30 = vld [vmem:[#allocation10 + $0x38] sm:$0xff] }
  0x20   :  { %301 = vmatpush.bf16.msra.mxu2 %v553_v14  ;;  %v108_v31 = vld [vmem:[#allocation7] sm:$0x3]  ;;  %396 = vmatpush.bf16.msra.mxu0 %v570_v30  ;;  %v569_v32 = vld [vmem:[#allocation10 + $0x30] sm:$0xff]  ;;  %v568_v45 = vld [vmem:[#allocation10 + $0x28] sm:$0xff] }
  0x21   :  { %445 = vmatmul.msk.bf16.vlgmr.msra.gmra.mxu1 %vm134_vm0, %v103_v15  ;;  %314 = vmatpush.bf16.msra.mxu3 %v561_v16  ;;  %v110_v33 = vperm.slane %v108_v31, 0  ;;  %v111_v39 = vperm.slane %v108_v31, 1  ;;  %v567_v46 = vld [vmem:[#allocation10 + $0x20] sm:$0xff]  ;;  %v566_v47 = vld [vmem:[#allocation10 + $0x18] sm:$0xff]  ;;  %v565_v48 = vld [vmem:[#allocation10 + $0x10] sm:$0xff] }
  0x22   :  { %157 = vmatpush.bf16.msrb.mxu1 %v444_v10  ;;  %v564_v49 = vld [vmem:[#allocation10 + $0x8] sm:$0xff]  ;;  %v563_v50 = vld [vmem:[#allocation10] sm:$0xff]  ;;  %v581_v53 = vld [vmem:[%s813_s4] ss:$0 sm:$0xff] }
  0x23   :  { %v582_v60 = vld [vmem:[%s815_s6] ss:$0 sm:$0xff] }
  0x24   :  { %302 = vmatpush.bf16.msra.mxu2 %v552_v18  ;;  %397 = vmatpush.bf16.msra.mxu0 %v569_v32 }
  0x25   :  { %315 = vmatpush.bf16.msra.mxu3 %v560_v23 }
  0x26   :  { %158 = vmatpush.bf16.msrb.mxu1 %v436_v17 }
  0x28   :  { %303 = vmatpush.bf16.msra.mxu2 %v551_v19  ;;  %398 = vmatpush.bf16.msra.mxu0 %v568_v45 }
  0x29   :  { %316 = vmatpush.bf16.msra.mxu3 %v559_v25 }
  0x2c   :  { %304 = vmatpush.bf16.msra.mxu2 %v550_v20  ;;  %399 = vmatpush.bf16.msra.mxu0 %v567_v46 }
  0x2d   :  { %317 = vmatpush.bf16.msra.mxu3 %v558_v26 }
  0x30   :  { %305 = vmatpush.bf16.msra.mxu2 %v549_v21  ;;  %400 = vmatpush.bf16.msra.mxu0 %v566_v47 }
  0x31   :  { %446 = vmatmul.msk.bf16.vlgmr.msrb.gmra.mxu1 %vm134_vm0, %v103_v15  ;;  %318 = vmatpush.bf16.msra.mxu3 %v557_v27 }
  0x34   :  { %306 = vmatpush.bf16.msra.mxu2 %v548_v22  ;;  %401 = vmatpush.bf16.msra.mxu0 %v565_v48 }
  0x35   :  { %319 = vmatpush.bf16.msra.mxu3 %v556_v28 }
  0x38   :  { %307 = vmatpush.bf16.msra.mxu2 %v547_v24  ;;  %402 = vmatpush.bf16.msra.mxu0 %v564_v49 }
  0x39   :  { %320 = vmatpush.bf16.msra.mxu3 %v555_v29 }
  0x3c   :  { %403 = vmatpush.bf16.msra.mxu0 %v563_v50 }
  0x9e   :  { %v147_v34 = vpop.f32.mrf.mxu1 }
  0x9f   :  { %v148_v35 = vadd.f32 %v147_v34, %v110_v33 }
  0xa1   :  { %v164_v36 = vmax.f32 %v148_v35, 0.0 }
  0xa3   :  { %v166_v37 = vpack.c.bf16 %v164_v36, %v164_v36 }
  0xa5   :  { %308 = vmatmul.bf16.vlgmr.msra.gmra.mxu2 %v166_v37 }
  0xa6   :  { %v149_v38 = vpop.f32.mrf.mxu1 }
  0xae   :  { %v160_v40 = vpop.f32.mrf.mxu1 }
  0xaf   :  { %v161_v41 = vadd.f32 %v160_v40, %v111_v39 }
  0xb1   :  { %v165_v42 = vmax.f32 %v161_v41, 0.0 }
  0xb3   :  { %v167_v43 = vpack.c.bf16 %v165_v42, %v165_v42 }
  0xb5   :  { %321 = vmatmul.bf16.vlgmr.msra.gmra.mxu3 %v167_v43 }
  0xb6   :  { %v162_v44 = vpop.f32.mrf.mxu1 }
 0x128   :  { %v309_v51 = vpop.f32.mrf.mxu2 }
 0x129   :  { %v310_v54 = vadd.f32 %v581_v53, %v309_v51 }
 0x130   :  { %v311_v52 = vpop.f32.mrf.mxu2 }
 0x138   :  { %v322_v55 = vpop.f32.mrf.mxu3 }
 0x139   :  { %v323_v56 = vadd.f32 %v322_v55, %v310_v54 }
 0x13b   :  { %v326_v57 = vmax.f32 %v323_v56, 0.0 }
 0x13d   :  { %v327_v58 = vpack.c.bf16 %v326_v57, %v326_v57 }
 0x13f   :  { %404 = vmatmul.bf16.vlgmr.msra.gmra.mxu0 %v327_v58 }
 0x140   :  { %v324_v59 = vpop.f32.mrf.mxu3 }
 0x1bc   :  { %v405_v61 = vpop.f32.mrf.mxu0 }
 0x1bd   :  { %v406_v62 = vadd.f32 %v582_v60, %v405_v61 }
 0x1bf   :  { %409 = vst [vmem:[#allocation11] sm:$0xff] %v406_v62 }
 0x1c0   :  { %420 = dma.vmem_to_hbm [thread:$0]  %s416_s30, 128, %s418_s10, [#allocation4]  }
 0x1c4   :  { %v407_v63 = vpop.f32.mrf.mxu0 }
 0x1c5   :  { %733 = dma.done.wait [#allocation4], 128  }
 0x1c6   :  { %734 = vsyncadd [#allocation4], 4294967168 }
 0x1c7   :  { %425 = vsyncpa [#allocation3], 1 }
 0x1c8   :  { %426 = vsyncpa [#allocation6], 1 }
 0x1c9   :  { %427 = vsyncpa [#allocation9], 1 }
 0x1ca   :  { %428 = vsyncpa [#allocation4], 1 }

</bundles_post_ra>
